<compile_context>
chip_gen: v6e
topology: v6e:2x2x1
jax: 0.10.0
libtpu: 0.0.40
codegen_flags: <defaults>
</compile_context>

<pallas_src>
import functools

import jax
import jax.numpy as jnp
from jax.experimental import pallas as pl
from jax.experimental.pallas import tpu as pltpu


_VMEM_LIMIT_BYTES = 32 * 1024 * 1024   # <= physical VMEM on v5e/v6e/v7x


# ----------------------------------------------------------------------------
# Kernels
# ----------------------------------------------------------------------------
def _stats_kernel(x_ref, s1_ref, s2_ref, *, matmul_dtype):
    """Pass 1: per-sample streaming statistics.

    x_ref:  (1, C, tile_hw) block of the (N, C, HW_pad) activations.
    s1_ref: (1, C, 1) per-n partial sum of x (resident over the tile axis).
    s2_ref: (1, C, C) per-n partial sum of x x^T (resident over the tile axis).
    """
    @pl.when(pl.program_id(1) == 0)
    def _():
        s1_ref[...] = jnp.zeros_like(s1_ref)
        s2_ref[...] = jnp.zeros_like(s2_ref)

    x = x_ref[0].astype(jnp.float32)                       # (C, tile_hw)
    s1_ref[...] += jnp.sum(x, axis=-1, keepdims=True)[None]

    xm = x.astype(matmul_dtype)
    # x @ x^T with the contraction on the lane axis of both operands (no
    # transpose materialized); bf16 operands feed the MXU natively when C>=128.
    s2_ref[...] += jax.lax.dot_general(
        xm, xm, dimension_numbers=(((1,), (1,)), ((), ())),
        preferred_element_type=jnp.float32)[None]


def _whiten_kernel(wm_ref, mean_ref, x_ref, xn_ref, *, matmul_dtype):
    """Pass 2: xn_tile = wm @ (x_tile - mean)."""
    x = x_ref[0].astype(jnp.float32)                       # (C, tile_hw)
    xc = x - mean_ref[...]                                 # broadcast (C, 1)
    xn = jnp.dot(wm_ref[...].astype(matmul_dtype), xc.astype(matmul_dtype),
                 preferred_element_type=jnp.float32)
    xn_ref[0] = xn.astype(xn_ref.dtype)


# ----------------------------------------------------------------------------
# Wrapper helpers
# ----------------------------------------------------------------------------
def _pick_tile_hw(hw_pad, c, itemsize, target_bytes=2 << 20):
    """Largest multiple-of-128 divisor of hw_pad with c*tile*itemsize <= ~2MiB."""
    if hw_pad <= 128 or hw_pad % 128 != 0:
        return hw_pad  # full-extent block is always a legal BlockSpec dim
    target = max(128, (target_bytes // (itemsize * max(c, 1))) // 128 * 128)
    target = min(target, hw_pad)
    t = (target // 128) * 128
    while t >= 128:
        if hw_pad % t == 0:
            return t
        t -= 128
    return hw_pad


def _matmul_dtype(c):
    # bf16 is MXU-native on v5e/v6e/v7x; f32 matmul is emulated (multi-pass).
    # Only trade precision for throughput once the contraction is big enough
    # to be compute-bound; small C stays in f32 (and matches the reference).
    return jnp.bfloat16 if c >= 128 else jnp.float32


def _stats_call(x3, tile_hw, matmul_dtype):
    N, C, HWp = x3.shape
    n_t = HWp // tile_hw
    kernel = functools.partial(_stats_kernel, matmul_dtype=matmul_dtype)
    return pl.pallas_call(
        kernel,
        grid=(N, n_t),
        in_specs=[pl.BlockSpec((1, C, tile_hw), lambda n, t: (n, 0, t))],
        out_specs=(
            pl.BlockSpec((1, C, 1), lambda n, t: (n, 0, 0)),
            pl.BlockSpec((1, C, C), lambda n, t: (n, 0, 0)),
        ),
        out_shape=(
            jax.ShapeDtypeStruct((N, C, 1), jnp.float32),
            jax.ShapeDtypeStruct((N, C, C), jnp.float32),
        ),
        compiler_params=pltpu.CompilerParams(
            dimension_semantics=("parallel", "arbitrary"),
            vmem_limit_bytes=_VMEM_LIMIT_BYTES),
    )(x3)


def _whiten_call(x3, wm, mean, tile_hw, out_dtype, matmul_dtype):
    N, C, HWp = x3.shape
    n_t = HWp // tile_hw
    kernel = functools.partial(_whiten_kernel, matmul_dtype=matmul_dtype)
    # NOTE: if profiling shows exposed DMA at step boundaries, add
    # pipeline_mode=pl.Buffered(3) to the x / xn BlockSpecs below.
    return pl.pallas_call(
        kernel,
        grid=(N, n_t),
        in_specs=[
            pl.BlockSpec((C, C), lambda n, t: (0, 0)),
            pl.BlockSpec((C, 1), lambda n, t: (0, 0)),
            pl.BlockSpec((1, C, tile_hw), lambda n, t: (n, 0, t)),
        ],
        out_specs=pl.BlockSpec((1, C, tile_hw), lambda n, t: (n, 0, t)),
        out_shape=jax.ShapeDtypeStruct((N, C, HWp), out_dtype),
        compiler_params=pltpu.CompilerParams(
            dimension_semantics=("parallel", "parallel"),
            vmem_limit_bytes=_VMEM_LIMIT_BYTES),
    )(wm.astype(jnp.float32), mean.astype(jnp.float32), x3)


def _newton_schulz(s1, s2, m_total, T, eps):
    """Tiny (C x C) epilogue in plain JAX: Sigma, rTr, Newton-Schulz, wm."""
    C = s1.shape[0]
    inv_m = 1.0 / float(m_total)
    mean = s1 * inv_m                                      # (C, 1)
    eye = jnp.eye(C, dtype=jnp.float32)
    sigma = s2 * inv_m - mean @ mean.T + eps * eye
    rTr = 1.0 / jnp.trace(sigma)
    sigma_n = sigma * rTr
    P = eye
    for _ in range(T):
        P = 1.5 * P - 0.5 * (P @ P @ P @ sigma_n)
    wm = P * jnp.sqrt(rTr)
    return wm, mean


# ----------------------------------------------------------------------------
# Forward
# ----------------------------------------------------------------------------
def iternorm_single_forward(X, running_mean, running_wm,
                            T=5, eps=1e-5, momentum=0.1, training=True):
    """Forward pass of IterNorm_Single.

    X: (N, C, H, W), NCHW (matching PyTorch), any float dtype.
    Returns (X_hat, new_running_mean, new_running_wm).
    """
    N, C, H, W = X.shape
    HW = H * W
    m_total = N * HW

    # Free reshape; stream X in its native dtype (kernels upcast per tile).
    x3 = X.reshape(N, C, HW)

    # Keep blocks lane-dense: pad the spatial axis to a multiple of 128.
    # Zeros contribute nothing to S1/S2 because m_total is the true N*H*W;
    # the padded tail of the whitened output is sliced off afterwards.
    if HW % 128 != 0:
        HW_pad = ((HW + 127) // 128) * 128
        x3 = jnp.pad(x3, ((0, 0), (0, 0), (0, HW_pad - HW)))
    else:
        HW_pad = HW

    tile_hw = _pick_tile_hw(HW_pad, C, x3.dtype.itemsize)
    matmul_dtype = _matmul_dtype(C)

    if training:
        s1_part, s2_part = _stats_call(x3, tile_hw, matmul_dtype)
        s1 = jnp.sum(s1_part, axis=0)                      # (C, 1)
        s2 = jnp.sum(s2_part, axis=0)                      # (C, C)
        wm, mean = _newton_schulz(s1, s2, m_total, T, eps)
        new_running_mean = momentum * mean + (1.0 - momentum) * running_mean
        new_running_wm = momentum * wm + (1.0 - momentum) * running_wm
    else:
        wm, mean = running_wm, running_mean
        new_running_mean, new_running_wm = running_mean, running_wm

    xn3 = _whiten_call(x3, wm, mean, tile_hw, X.dtype, matmul_dtype)
    if HW_pad != HW:
        xn3 = xn3[:, :, :HW]
    X_hat = xn3.reshape(N, C, H, W)
    return X_hat, new_running_mean, new_running_wm


# ----------------------------------------------------------------------------
# Pure-JAX reference of the PyTorch forward (training mode, centered form)
# ----------------------------------------------------------------------------
def _reference_jax(X, T=5, eps=1e-5):
    N, C, H, W = X.shape
    x = jnp.transpose(X, (1, 0, 2, 3)).reshape(C, -1).astype(jnp.float32)
    d, m = x.shape
    mean = x.mean(-1, keepdims=True)
    xc = x - mean
    eye = jnp.eye(d, dtype=jnp.float32)
    sigma = eps * eye + (1.0 / m) * (xc @ xc.T)
    rTr = 1.0 / jnp.sum(sigma * eye)
    sigma_n = sigma * rTr
    P = eye
    for _ in range(T):
        P = 1.5 * P - 0.5 * (P @ P @ P @ sigma_n)
    wm = P * jnp.sqrt(rTr)
    xn = wm @ xc
    Xn = jnp.transpose(xn.reshape(C, N, H, W), (1, 0, 2, 3))
    return Xn, mean, wm


if __name__ == "__main__":
    key = jax.random.PRNGKey(0)
    T, eps, momentum = 5, 1e-5, 0.1

    # --- main check: lane-aligned spatial size ---------------------------
    N, C, H, W = 2, 4, 16, 16
    X = jax.random.normal(key, (N, C, H, W), dtype=jnp.float32) * 2.0 + 0.5

    running_mean = jnp.zeros((C, 1), dtype=jnp.float32)   # as in __init__
    running_wm = jnp.eye(C, dtype=jnp.float32)

    X_hat, new_rm, new_rwm = iternorm_single_forward(
        X, running_mean, running_wm, T=T, eps=eps, momentum=momentum,
        training=True)
    X_hat = jax.block_until_ready(X_hat)
    new_rm = jax.block_until_ready(new_rm)
    new_rwm = jax.block_until_ready(new_rwm)

    X_ref, mean_ref, wm_ref = _reference_jax(X, T=T, eps=eps)
    assert X_hat.shape == (N, C, H, W)
    max_err = float(jnp.max(jnp.abs(X_hat - X_ref)))
    assert max_err < 1e-3, f"output mismatch vs reference: {max_err}"

    rm_ref = momentum * mean_ref + (1.0 - momentum) * running_mean
    rwm_ref = momentum * wm_ref + (1.0 - momentum) * running_wm
    assert float(jnp.max(jnp.abs(new_rm - rm_ref))) < 1e-3
    assert float(jnp.max(jnp.abs(new_rwm - rwm_ref))) < 1e-3

    # eval path (same tiled whitening kernel, running stats)
    X_eval, _, _ = iternorm_single_forward(
        X, new_rm, new_rwm, T=T, eps=eps, momentum=momentum, training=False)
    jax.block_until_ready(X_eval)

    # --- padding path check: H*W not a multiple of 128 -------------------
    N2, C2, H2, W2 = 2, 8, 14, 14
    X2 = jax.random.normal(jax.random.PRNGKey(1), (N2, C2, H2, W2),
                           dtype=jnp.float32) - 0.3
    rm2 = jnp.zeros((C2, 1), dtype=jnp.float32)
    rwm2 = jnp.eye(C2, dtype=jnp.float32)
    X2_hat, _, _ = iternorm_single_forward(
        X2, rm2, rwm2, T=T, eps=eps, momentum=momentum, training=True)
    X2_hat = jax.block_until_ready(X2_hat)
    X2_ref, _, _ = _reference_jax(X2, T=T, eps=eps)
    max_err2 = float(jnp.max(jnp.abs(X2_hat - X2_ref)))
    assert max_err2 < 1e-3, f"padded-path mismatch vs reference: {max_err2}"

    print("KERNEL_OK")
</pallas_src>

<mosaic_0001>
module attributes {stable_mosaic.version = 11 : i64} {
  func.func @_stats_kernel(%arg0: i32, %arg1: i32, %arg2: memref<1x4x256xf32, #tpu.memory_space<vmem>>, %arg3: memref<1x4x1xf32, #tpu.memory_space<vmem>>, %arg4: memref<1x4x4xf32, #tpu.memory_space<vmem>>) attributes {dimension_semantics = [#tpu.dimension_semantics<parallel>, #tpu.dimension_semantics<arbitrary>], iteration_bounds = array<i64: 2, 1>, scalar_prefetch = 0 : i64, scratch_operands = 0 : i64, tpu.core_type = #tpu.core_type<tc>, window_params = [{transform_indices = @transform_0, window_bounds = array<i64: 1, 4, 256>}, {transform_indices = @transform_1, window_bounds = array<i64: 1, 4, 1>}, {transform_indices = @transform_2, window_bounds = array<i64: 1, 4, 4>}]} {
    %c0_i32 = arith.constant 0 : i32
    %0 = arith.cmpi eq, %arg1, %c0_i32 : i32
    %1 = arith.extui %0 : i1 to i32
    %c0_i32_0 = arith.constant 0 : i32
    %2 = arith.cmpi ne, %1, %c0_i32_0 : i32
    scf.if %2 {
      %cst_16 = arith.constant 0.000000e+00 : f32
      %16 = vector.broadcast %cst_16 : f32 to vector<1x4x1xf32>
      %c0_17 = arith.constant 0 : index
      %c0_18 = arith.constant 0 : index
      %c0_19 = arith.constant 0 : index
      %17 = vector.load %arg3[%c0_17, %c0_18, %c0_19] : memref<1x4x1xf32, #tpu.memory_space<vmem>>, vector<1x4x1xf32>
      tpu.vector_store %arg3[%c0_17, %c0_18, %c0_19], %16 {strides = array<i32>} : memref<1x4x1xf32, #tpu.memory_space<vmem>>, vector<1x4x1xf32>,
      %cst_20 = arith.constant 0.000000e+00 : f32
      %18 = vector.broadcast %cst_20 : f32 to vector<1x4x4xf32>
      %c0_21 = arith.constant 0 : index
      %c0_22 = arith.constant 0 : index
      %c0_23 = arith.constant 0 : index
      %19 = vector.load %arg4[%c0_21, %c0_22, %c0_23] : memref<1x4x4xf32, #tpu.memory_space<vmem>>, vector<1x4x4xf32>
      tpu.vector_store %arg4[%c0_21, %c0_22, %c0_23], %18 {strides = array<i32>} : memref<1x4x4xf32, #tpu.memory_space<vmem>>, vector<1x4x4xf32>,
    } else {
    }
    %c0 = arith.constant 0 : index
    %c0_1 = arith.constant 0 : index
    %c0_2 = arith.constant 0 : index
    %3 = vector.load %arg2[%c0, %c0_1, %c0_2] : memref<1x4x256xf32, #tpu.memory_space<vmem>>, vector<1x4x256xf32>
    %4 = vector.shape_cast %3 : vector<1x4x256xf32> to vector<4x256xf32>
    %c0_3 = arith.constant 0 : index
    %c0_4 = arith.constant 0 : index
    %c0_5 = arith.constant 0 : index
    %5 = vector.load %arg3[%c0_3, %c0_4, %c0_5] : memref<1x4x1xf32, #tpu.memory_space<vmem>>, vector<1x4x1xf32>
    %cst = arith.constant dense<0.000000e+00> : vector<4xf32>
    %6 = vector.multi_reduction <add>, %4, %cst [1] : vector<4x256xf32> to vector<4xf32>
    %7 = vector.shape_cast %6 : vector<4xf32> to vector<4x1xf32>
    %8 = vector.shape_cast %7 : vector<4x1xf32> to vector<1x4x1xf32>
    %9 = arith.addf %5, %8 : vector<1x4x1xf32>
    %c0_6 = arith.constant 0 : index
    %c0_7 = arith.constant 0 : index
    %c0_8 = arith.constant 0 : index
    %10 = vector.load %arg3[%c0_6, %c0_7, %c0_8] : memref<1x4x1xf32, #tpu.memory_space<vmem>>, vector<1x4x1xf32>
    tpu.vector_store %arg3[%c0_6, %c0_7, %c0_8], %9 {strides = array<i32>} : memref<1x4x1xf32, #tpu.memory_space<vmem>>, vector<1x4x1xf32>,
    %c0_9 = arith.constant 0 : index
    %c0_10 = arith.constant 0 : index
    %c0_11 = arith.constant 0 : index
    %11 = vector.load %arg4[%c0_9, %c0_10, %c0_11] : memref<1x4x4xf32, #tpu.memory_space<vmem>>, vector<1x4x4xf32>
    %cst_12 = arith.constant dense<0.000000e+00> : vector<4x4xf32>
    %12 = tpu.matmul %4, %4, %cst_12 {dimension_numbers = #tpu.dot_dimension_numbers<[1], [1], [0], [0], [0, 0, 1, 0], [], []>} : vector<4x256xf32>, vector<4x256xf32>, vector<4x4xf32> -> vector<4x4xf32>
    %13 = vector.shape_cast %12 : vector<4x4xf32> to vector<1x4x4xf32>
    %14 = arith.addf %11, %13 : vector<1x4x4xf32>
    %c0_13 = arith.constant 0 : index
    %c0_14 = arith.constant 0 : index
    %c0_15 = arith.constant 0 : index
    %15 = vector.load %arg4[%c0_13, %c0_14, %c0_15] : memref<1x4x4xf32, #tpu.memory_space<vmem>>, vector<1x4x4xf32>
    tpu.vector_store %arg4[%c0_13, %c0_14, %c0_15], %14 {strides = array<i32>} : memref<1x4x4xf32, #tpu.memory_space<vmem>>, vector<1x4x4xf32>,
    return
  }
  func.func @transform_0(%arg0: i32, %arg1: i32) -> (i32, i32, i32) {
    %c0_i32 = arith.constant 0 : i32
    %c0_i32_0 = arith.constant 0 : i32
    return %arg0, %c0_i32, %arg1 : i32, i32, i32
  }
  func.func @transform_1(%arg0: i32, %arg1: i32) -> (i32, i32, i32) {
    %c0_i32 = arith.constant 0 : i32
    %c0_i32_0 = arith.constant 0 : i32
    %c0_i32_1 = arith.constant 0 : i32
    return %arg0, %c0_i32, %c0_i32_0 : i32, i32, i32
  }
  func.func @transform_2(%arg0: i32, %arg1: i32) -> (i32, i32, i32) {
    %c0_i32 = arith.constant 0 : i32
    %c0_i32_0 = arith.constant 0 : i32
    %c0_i32_1 = arith.constant 0 : i32
    return %arg0, %c0_i32, %c0_i32_0 : i32, i32, i32
  }
}

</mosaic_0001>

<bundles_post_ra>
// kernel: tpu_custom_call.1
= control target key start
LH: loop header
LB: loop body
LE: loop exit
PB: predicated region body
PF: predicated region fallthrough
CT: control target
= control target key end

     0   :  { %8 = vsyncpa [#allocation3], 0  ;;  %s772_s0 = inlined_call_operand.hbm [shape: f32[2,4,256], index: 0, kind: input, shape index: {}]   ;;  %s773_s1 = inlined_call_operand.vmem [shape: f32[2,4,1], index: 1, kind: output, shape index: {0}]   ;;  %s774_s2 = inlined_call_operand.hbm [shape: f32[2,4,4], index: 2, kind: output, shape index: {1}]  }
   0x1   :  { %10 = vsyncpa [#allocation3 + $0x1], 0 }
   0x2   :  { %11 = vsyncpa [#allocation4], 0 }
   0x3   :  { %13 = vsyncpa [#allocation4 + $0x1], 0  ;;  %s618_s9 = smov 0   ;;  %s620_s10 = smov 0  }
   0x4   :  { %s622_s11 = smov 0   ;;  %s624_s12 = smov 0  }
   0x5   :  { %s626_s13 = smov 0   ;;  %s628_s14 = smov 0  }
   0x6 LB: > { %s410_s15 = sadd.s32 4294967295, %s598_s14   ;;  %s411_s16 = sadd.s32 4294967294, %s598_s14   ;;  %s598_s14 = sphi %s628_s14, %s19_s14   ;;  %s594_s13 = sphi %s626_s13, %s786_s13   ;;  %s590_s12 = sphi %s624_s12, %s785_s12   ;;  %s586_s11 = sphi %s622_s11, %s784_s11   ;;  %s582_s10 = sphi %s620_s10, %s783_s10   ;;  %s578_s9 = sphi %s618_s9, %s782_s9  }
   0x7   : > { %s31_s17 = sadd.s32 1, %s594_s13  ;;  %s40_s18 = sadd.s32 1, %s586_s11 }
   0x8   : > { %p33_p0 = scmp.ge.s32.totalorder %s31_s17, 2  ;;  %p47_p1 = scmp.ne.s32.totalorder %s586_s11, %s582_s10 }
   0x9   : > { %p48_p2 = scmp.eq.s32.totalorder %s598_s14, 0  ;;  %p53_p3 = scmp.ne.s32.totalorder %s582_s10, %s578_s9 }
   0xa   : > { %s788_s17 = smov (%p33_p0, %s31_s17), 0  ;;  %p54_p5 = scmp.eq.s32.totalorder %s410_s15, 0 }
   0xb   : > { %p659_p4 = por %p48_p2, %p47_p1  ;;  %s35_s20 = ssub.s32 %s594_s13, %s788_s17 }
   0xc   : > { %p103_p6 = scmp.eq.s32.totalorder %s410_s15, 1  ;;  %p38_p7 = scmp.eq.s32.totalorder %s35_s20, 0 }
   0xd   : > { %p665_p8 = por %p54_p5, %p53_p3  ;;  %p109_p10 = scmp.eq.s32.totalorder %s411_s16, 1 }
   0xe   : > { %p669_p9 = por %p103_p6, %p47_p1  ;;  %p438_p13 = scmp.lt.s32.totalorder %s598_s14, 2 }
   0xf   : > { %s674_s23 = scalar_select %p38_p7, %s586_s11, %s40_s18  }
  0x10   : > { %p676_p11 = por %p109_p10, %p53_p3  ;;  %s129_s25 = sand.u32 1, %s586_s11  }
  0x11   : > { %s414_s26 = sshll.u32 %s129_s25, 3  ;;  %s425_s27 = sshll.u32 %s594_s13, 7 }
  0x12   : > { %s778_s24 = scalar_select %p676_p11, 1, 0 }
  0x13   : > { %s141_s30 = scalar_lea.hbm %s772_s0, %s425_s27  ;;  %s133_s3 = scalar_lea.vmem [#allocation2], %s414_s26 }
  0x14   : > { %s143_s4 = sshll.u32 %s133_s3, 4  ;;  %p689_p0 = pnand %p438_p13, %p659_p4  ;;  %s144_s4 = int_to_ptr.vmem [resolvable:$true] %s143_s4 }
  0x15   : > { %p417_p1 = scmp.ge.s32.totalorder %s598_s14, 1  ;;  %p148_p2 = scmp.lt.s32.totalorder %s598_s14, 3 }
  0x16   : > { %s130_s6 = scalar_lea.sflag [#allocation3], %s129_s25  ;;  %p492_p3 = pneg %p689_p0 }
  0x17   : > { %s503_s7 = scalar_lea.vmem %s144_s4, 128  ;;  %s600_s8 = smov [#allocation2]  }
  0x18   : > { %p504_p5 = scmp.ne.s32.totalorder %s144_s4, %s503_s7  ;;  %s508_s15 = sshll.u32 %s600_s8, 4  ;;  %s509_s15 = int_to_ptr.vmem [resolvable:$false] %s508_s15 }
  0x19   : > { %s510_s16 = scalar_lea.vmem %s509_s15, 256  ;;  %p511_p10 = scmp.lt.s32.totalorder %s144_s4, %s509_s15 }
  0x1a   : > { %p506_p6 = pnand %p504_p5, %p492_p3  ;;  %p512_p12 = scmp.lt.s32.totalorder %s510_s16, %s503_s7 }
  0x1c   : > { %p507_p7 = pneg %p506_p6  ;;  %p513_p4 = por %p512_p12, %p511_p10 }
  0x1e   : > { %p514_p13 = pnand %p513_p4, %p507_p7 }
  0x20   : > { %517 = shalt.err (!%p514_p13)
}
  0x21   : > { %433 = dma.hbm_to_vmem [thread:$0]  (!%p689_p0), %s141_s30, 128, %s144_s4, %s130_s6  }
  0x22   : > { %p149_p11 = pnand %p417_p1, %p148_p2 }
  0x23   : > { %s704_s18 = sand.u32 (!%p149_p11), 1, %s582_s10  }
  0x24   : > { %152 = sbr.rel (%p149_p11) target bundleno = 257 (0x101), region = 24  ;;  %s418_s19 = sshll.u32 (!%p149_p11), %s704_s18, 3 }
  0x25   : > { %s155_s20 = scalar_lea.sflag (!%p149_p11), [#allocation3], %s704_s18  ;;  %s158_s25 = scalar_lea.vmem (!%p149_p11), [#allocation2], %s418_s19 }
  0x29   : > { %569 = dma.done.wait (%p665_p8), %s155_s20, 128  }
  0x2a   : > { %571 = vsyncadd (%p665_p8), %s155_s20, 4294967168  ;;  %s419_s26 = sshll.u32 %s704_s18, 2  ;;  %vm194_vm0 = vcmask 27648   ;;  %v601_v0 = vmov 0.0   ;;  %vm201_vm1 = vcmask 1043456   ;;  %v196_v1 = vld [vmem:[%s158_s25] sm:$0xff] }
  0x2b   : > { %s713_s27 = scalar_lea.vmem [#allocation5], %s419_s26  ;;  %v199_v2 = vcombine.high %v196_v1, %v196_v1  ;;  %v202_v3 = vsel %vm201_vm1, %v196_v1, 0.0  ;;  %p184_p8 = scmp.lt.s32.totalorder %s590_s12, 1  ;;  %vm192_vm2 = vcmask 3072  }
  0x2c   : > { %195 = vst.msk [vmem:[%s713_s27] sm:$0xf] %vm194_vm0, %v601_v0  ;;  %s422_s4 = sshll.u32 %s590_s12, 6  ;;  %s305_s5 = sshll.u32 %s713_s27, 4  ;;  %s306_s5 = int_to_ptr.vmem [resolvable:$true] %s305_s5 }
  0x2d   : > { %241 = vmatprep.subr.mxu0 %v199_v2  ;;  %275 = vmatprep.mubr.f32.mxu0 %v199_v2  ;;  %v203_v4 = vsel %vm201_vm1, %v199_v2, 0.0  ;;  %s185_s21 = scalar_select %p184_p8, %s590_s12, 1 }
  0x2e   : > { %242 = vmatpush1.xpose.msra.mxu0 %v196_v1  ;;  %v204_v5 = vadd.f32 %v203_v4, %v202_v3  ;;  %s728_s8 = scalar_lea.hbm %s774_s2, %s422_s4  ;;  %s289_s15 = scalar_lea.sflag [#allocation4], %s704_s18 }
  0x2f   : > { %s420_s28 = sshll.u32 %s185_s21, 2  ;;  %s518_s16 = scalar_lea.vmem %s306_s5, 64 }
  0x30   : > { %205 = vadd.xlane.f32.xlu0 %v204_v5  ;;  %s187_s3 = scalar_lea.vmem %s773_s1, %s420_s28  ;;  %p519_p11 = scmp.ne.s32.totalorder %s306_s5, %s518_s16 }
  0x31   : > { %276 = vmatmul.mubr.f32.vlgmr.msra.gmra.mxu0 %v196_v1  ;;  %193 = vst.msk [vmem:[%s187_s3] sm:$0xf] %vm192_vm2, %v601_v0  ;;  %s602_s19 = smov [#allocation5]  }
  0x32   : > { %p520_p12 = pnand %p519_p11, %p669_p9  ;;  %s522_s12 = sshll.u32 %s602_s19, 4  ;;  %s523_s12 = int_to_ptr.vmem [resolvable:$false] %s522_s12 }
  0x33   : > { %v210_v9 = vld [vmem:[%s713_s27] sm:$0xf]  ;;  %s524_s20 = scalar_lea.vmem %s523_s12, 128  ;;  %p525_p1 = scmp.lt.s32.totalorder %s306_s5, %s523_s12 }
  0x34   : > { %p521_p0 = pneg %p520_p12  ;;  %p526_p2 = scmp.lt.s32.totalorder %s524_s20, %s518_s16 }
  0x36   : > { %p527_p3 = por %p526_p2, %p525_p1 }
  0x38   : > { %v197_v6 = vld [vmem:[%s187_s3] sm:$0xf]  ;;  %p528_p5 = pnand %p527_p3, %p521_p0 }
  0xb9   : > { %v206_v7 = vpop.xlane.xlu0 %205 }
  0xba   : > { %v207_v8 = vadd.f32 %v206_v7, %v197_v6 }
  0xbc   : > { %209 = vst.msk [vmem:[%s187_s3] sm:$0xf] %vm192_vm2, %v207_v8 }
  0xf1   : > { %v277_v10 = vpop.f32.mrf.mxu0 }
  0xf2   : > { %v281_v11 = vadd.f32 %v277_v10, %v210_v9 }
  0xf3   : > { %v279_v12 = vpop.f32.mrf.mxu0 }
  0xf4   : > { %283 = vst.msk [vmem:[%s713_s27] sm:$0xf] %vm194_vm0, %v281_v11 }
  0xf5   : > { %531 = shalt.err (!%p528_p5)
}
  0xf6   : > { %s532_s25 = scalar_lea.hbm %s728_s8, 64  ;;  %s536_s27 = scalar_lea.hbm %s774_s2, 128 }
  0xf7   : > { %p533_p6 = scmp.ne.s32.totalorder %s728_s8, %s532_s25  ;;  %p537_p4 = scmp.lt.s32.totalorder %s728_s8, %s774_s2 }
  0xf8   : > { %p538_p13 = scmp.lt.s32.totalorder %s536_s27, %s532_s25 }
  0xf9   : > { %p534_p7 = pnand %p533_p6, %p669_p9 }
  0xfa   : > { %p539_p8 = por %p538_p13, %p537_p4 }
  0xfb   : > { %p535_p10 = pneg %p534_p7 }
  0xfd   : > { %p540_p11 = pnand %p539_p8, %p535_p10 }
  0xff   : > { %543 = shalt.err (!%p540_p11)
}
 0x100   : > { %428 = dma.vmem_to_hbm [thread:$0]  (%p669_p9), %s306_s5, 64, %s728_s8, %s289_s15  }
 0x101 PF: > { %s324_s29 = sand.u32 1, %s578_s9   ;;  %p780_p12 = scmp.ne.s32.totalorder %s778_s24, 0 }
 0x102   : > { %p781_p0 = scmp.ge.s32.totalorder %s598_s14, 2  ;;  %s325_s30 = scalar_lea.sflag [#allocation4], %s324_s29 }
 0x104   : > { %p435_p1 = pnand %p781_p0, %p780_p12 }
 0x106   : > { %p436_p2 = pneg %p435_p1 }
 0x108   : > { %573 = dma.done.wait (%p436_p2), %s325_s30, 64  }
 0x109   : > { %575 = vsyncadd (%p436_p2), %s325_s30, 4294967232  ;;  %s19_s14 = sadd.s32 1, %s598_s14   ;;  %s782_s9 = smov %s582_s10 }
 0x10a   : > { %p16_p3 = scmp.ge.s32.totalorder %s19_s14, 4   ;;  %s783_s10 = smov %s586_s11 }
 0x10b   : > { %s784_s11 = smov %s674_s23  ;;  %s785_s12 = smov %s594_s13 }
 0x10c   : > { %s786_s13 = smov %s788_s17  ;;  %18 = sbr.rel (!%p16_p3) target bundleno = 6 (0x6), region = 85 }
 0x111   :  { %330 = vsyncpa [#allocation3], 1 }
 0x112   :  { %332 = vsyncpa [#allocation3 + $0x1], 1 }
 0x113   :  { %333 = vsyncpa [#allocation4], 1 }
 0x114   :  { %335 = vsyncpa [#allocation4 + $0x1], 1 }

</bundles_post_ra>
